<compile_context>
chip_gen: v5e
topology: v5e:2x2
jax: 0.10.0
libtpu: 0.0.40
codegen_flags: <defaults>
</compile_context>

<pallas_src>
import math
from functools import partial

import jax
import jax.numpy as jnp
from jax import lax
from jax.experimental import pallas as pl
from jax.experimental.pallas import tpu as pltpu


def _round_up(x, m):
    return ((x + m - 1) // m) * m


def _cdiv(a, b):
    return (a + b - 1) // b


def _vmem_budget_bytes():
    """Per-call VMEM budget derived from the chip's physical VMEM."""
    phys = 64 << 20  # conservative default (v7x per-TensorCore VMEM)
    try:
        info = pltpu.get_tpu_info()
        phys = int(getattr(info, "vmem_capacity_bytes", phys))
    except Exception:
        pass
    # ~75% of physical, capped: ~48 MiB on v7x (64 MiB), ~96 MiB on v5e/v6e (128 MiB).
    return min(phys * 3 // 4, 100 << 20)


def _derive_tiles(B, T, n_embd, hidden, out_pad, x_isz, w_isz, budget):
    """VMEM-budget-aware (tb, tt, chunk) tile sizes."""
    # Batch tile: cdiv-based so padding waste is < tb rows, and >= 2 blocks
    # when B allows so both v7x TensorCores get work on the parallel axis.
    nb = max(1, _cdiv(B, 256))
    if B > 8:
        nb = max(nb, 2)
    tb = _round_up(_cdiv(B, nb), 8)
    # TODO(synk): for B <= 8 with very large T, split T across a parallel grid
    # axis with per-core partial sums plus a small combine pass (v7x megacore).

    # Weights are single-buffered (pl.Buffered(1)) -> counted once.
    fixed = (n_embd * hidden + hidden * out_pad) * w_isz
    fixed += 8 * (2 * n_embd + hidden + out_pad) * w_isz  # ln_w/ln_b/b1/b2 tiles

    def fits(tb_, tt_, chunk_):
        x_bytes = 2 * tb_ * tt_ * n_embd * x_isz          # double-buffered x
        acc = tb_ * n_embd * 4                             # f32 T-sum scratch
        tmp = tb_ * chunk_ * n_embd * 4                    # per-chunk f32 temp
        tmp += tb_ * (n_embd + hidden + out_pad) * 4       # finalize temps
        out_bytes = 2 * tb_ * out_pad * x_isz
        return fixed + x_bytes + acc + tmp + out_bytes <= budget

    tt_cap = min(_round_up(T, 8), 512)
    while True:
        tt = tt_cap
        while tt >= 8:                                     # shrink tt before tb
            chunk = next(c for c in (64, 32, 16, 8) if tt % c == 0)
            if fits(tb, tt, chunk):
                return tb, tt, chunk
            tt -= 8
        if tb <= 8:
            return 8, 8, 8                                 # best effort
        tb = max(8, _round_up(tb // 2, 8))


def _const_spec(shape):
    """BlockSpec for a grid-invariant operand; single-buffered when supported."""
    idx = lambda i, j: (0,) * len(shape)
    try:
        return pl.BlockSpec(shape, idx, pipeline_mode=pl.Buffered(1))
    except (TypeError, AttributeError):
        return pl.BlockSpec(shape, idx)


def _task_head_kernel(x_ref, lnw_ref, lnb_ref, w1_ref, b1_ref, w2_ref, b2_ref,
                      o_ref, acc_ref, *, t_total, tt, chunk, inv_t, eps, mask_t):
    j = pl.program_id(1)

    @pl.when(j == 0)
    def _init():
        acc_ref[...] = jnp.zeros_like(acc_ref)

    # Accumulate the sequence (T) sum in f32, chunk by chunk, so the f32 upcast
    # temporary is (tb, chunk, n_embd), not the full x tile.
    t_base = j * tt
    n_embd = x_ref.shape[-1]

    @pl.loop(0, tt // chunk)
    def _chunked_sum(c):
        off = pl.multiple_of(c * chunk, chunk)
        xc = x_ref[:, pl.ds(off, chunk), :].astype(jnp.float32)
        if mask_t:  # static flag: only traced when T is not tile-aligned
            row = t_base + off + lax.broadcasted_iota(jnp.int32, (chunk, n_embd), 0)
            xc = jnp.where((row < t_total)[None], xc, 0.0)
        acc_ref[...] += jnp.sum(xc, axis=1)

    @pl.when(j == pl.num_programs(1) - 1)
    def _finalize():
        xm = acc_ref[...] * inv_t                          # mean over T, f32
        mu = jnp.mean(xm, axis=-1, keepdims=True)
        xc = xm - mu
        var = jnp.mean(xc * xc, axis=-1, keepdims=True)
        xn = xc * lax.rsqrt(var + eps)                     # EUP rsqrt, f32 VPU math
        xn = xn * lnw_ref[...].astype(jnp.float32) + lnb_ref[...].astype(jnp.float32)

        # MXU matmuls in the weights' dtype, accumulated in f32.
        h = jnp.dot(xn.astype(w1_ref.dtype), w1_ref[...],
                    preferred_element_type=jnp.float32)
        h = jnp.maximum(h + b1_ref[...].astype(jnp.float32), 0.0)   # ReLU (VPU)
        out = jnp.dot(h.astype(w2_ref.dtype), w2_ref[...],
                      preferred_element_type=jnp.float32)
        out = out + b2_ref[...].astype(jnp.float32)
        o_ref[...] = out.astype(o_ref.dtype)               # lane-dense store


def task_head_forward(x, ln_w, ln_b, w1, b1, w2, b2, *, eps=1e-5,
                      tb=None, tt=None, x_pipeline_buffers=None):
    """TaskHead forward.

    x:     (B, T, n_embd)
    ln_w:  (n_embd,)   ln_b: (n_embd,) or None (bias=False LayerNorm)
    w1:    (n_embd, n_embd//2)   b1: (n_embd//2,)
    w2:    (n_embd//2, out_dim)  b2: (out_dim,)
    Weights are stored (in, out), i.e. transposed vs. PyTorch's (out, in).
    Returns (B, out_dim).
    """
    B, T, n_embd = x.shape
    hidden = w1.shape[1]
    out_dim = w2.shape[1]

    if ln_b is None:
        ln_b = jnp.zeros((n_embd,), dtype=ln_w.dtype)

    out_pad = _round_up(max(out_dim, 1), 128)              # lane-dense output

    budget = _vmem_budget_bytes()
    d_tb, d_tt, chunk = _derive_tiles(B, T, n_embd, hidden, out_pad,
                                      x.dtype.itemsize, w1.dtype.itemsize, budget)
    tb = d_tb if tb is None else _round_up(tb, 8)
    tt = d_tt if tt is None else _round_up(tt, 8)
    if tt % chunk != 0:
        chunk = next(c for c in (64, 32, 16, 8) if tt % c == 0)

    # No jnp.pad of x: the cdiv grid + in-kernel T mask handle tails; output
    # rows beyond B are dropped by the pipeline and padded columns sliced off.
    w2p = jnp.pad(w2, ((0, 0), (0, out_pad - out_dim)))
    b2p = jnp.pad(b2, ((0, out_pad - out_dim),))

    lnw2d = ln_w.reshape(1, n_embd)
    lnb2d = ln_b.reshape(1, n_embd)
    b1_2d = b1.reshape(1, hidden)
    b2_2d = b2p.reshape(1, out_pad)

    grid = (_cdiv(B, tb), _cdiv(T, tt))

    x_spec_kwargs = {}
    if x_pipeline_buffers is not None:   # optional pipeline-depth sweep knob
        x_spec_kwargs["pipeline_mode"] = pl.Buffered(int(x_pipeline_buffers))
    x_spec = pl.BlockSpec((tb, tt, n_embd), lambda i, j: (i, j, 0), **x_spec_kwargs)

    cost = pl.CostEstimate(
        flops=2 * B * (n_embd * hidden + hidden * out_pad) + 2 * B * T * n_embd,
        transcendentals=B,
        bytes_accessed=B * T * n_embd * x.dtype.itemsize
        + w1.size * w1.dtype.itemsize + w2p.size * w2.dtype.itemsize
        + 2 * n_embd * ln_w.dtype.itemsize
        + hidden * b1.dtype.itemsize + out_pad * b2.dtype.itemsize
        + B * out_pad * x.dtype.itemsize,
    )

    kernel = partial(_task_head_kernel, t_total=T, tt=tt, chunk=chunk,
                     inv_t=1.0 / T, eps=eps, mask_t=(T % tt != 0))

    out = pl.pallas_call(
        kernel,
        out_shape=jax.ShapeDtypeStruct((B, out_pad), x.dtype),
        grid_spec=pltpu.PrefetchScalarGridSpec(
            num_scalar_prefetch=0,
            grid=grid,
            in_specs=[
                x_spec,                           # x tile (tb, tt, n_embd)
                _const_spec((1, n_embd)),         # ln weight
                _const_spec((1, n_embd)),         # ln bias
                _const_spec((n_embd, hidden)),    # W1
                _const_spec((1, hidden)),         # b1
                _const_spec((hidden, out_pad)),   # W2 (lane-padded)
                _const_spec((1, out_pad)),        # b2 (lane-padded)
            ],
            out_specs=pl.BlockSpec((tb, out_pad), lambda i, j: (i, 0)),
            scratch_shapes=[pltpu.VMEM((tb, n_embd), jnp.float32)],  # T-sum acc
        ),
        compiler_params=pltpu.CompilerParams(
            dimension_semantics=("parallel", "arbitrary"),
            vmem_limit_bytes=int(budget),
        ),
        cost_estimate=cost,
    )(x, lnw2d, lnb2d, w1, b1_2d, w2p, b2_2d)

    return out[:, :out_dim]


def reference_forward(x, ln_w, ln_b, w1, b1, w2, b2, eps=1e-5):
    xf = x.astype(jnp.float32)
    xm = xf.mean(axis=1)
    mu = xm.mean(axis=-1, keepdims=True)
    var = ((xm - mu) ** 2).mean(axis=-1, keepdims=True)
    xn = (xm - mu) / jnp.sqrt(var + eps)
    xn = xn * ln_w + (ln_b if ln_b is not None else 0.0)
    h = jnp.maximum(xn @ w1 + b1, 0.0)
    return h @ w2 + b2


if __name__ == "__main__":
    # Small shapes consistent with the module: n_embd=32 -> hidden=16, output_dim=4.
    B, T, n_embd, out_dim = 2, 8, 32, 4
    hidden = n_embd // 2

    key = jax.random.PRNGKey(0)
    kx, klnw, klnb, kw1, kb1, kw2, kb2 = jax.random.split(key, 7)

    x = jax.random.normal(kx, (B, T, n_embd), dtype=jnp.float32)
    ln_w = 1.0 + 0.1 * jax.random.normal(klnw, (n_embd,), dtype=jnp.float32)
    ln_b = 0.01 * jax.random.normal(klnb, (n_embd,), dtype=jnp.float32)
    w1 = jax.random.normal(kw1, (n_embd, hidden), dtype=jnp.float32) / math.sqrt(n_embd)
    b1 = 0.01 * jax.random.normal(kb1, (hidden,), dtype=jnp.float32)
    w2 = jax.random.normal(kw2, (hidden, out_dim), dtype=jnp.float32) / math.sqrt(hidden)
    b2 = 0.01 * jax.random.normal(kb2, (out_dim,), dtype=jnp.float32)

    out = task_head_forward(x, ln_w, ln_b, w1, b1, w2, b2)
    out = jax.block_until_ready(out)

    ref = reference_forward(x, ln_w, ln_b, w1, b1, w2, b2)
    assert out.shape == (B, out_dim)
    assert jnp.allclose(out, ref, atol=1e-4, rtol=1e-4), "mismatch vs JAX reference"

    print("KERNEL_OK")
</pallas_src>

<mosaic_0001>
module attributes {stable_mosaic.version = 11 : i64} {
  func.func @_task_head_kernel(%arg0: i32, %arg1: i32, %arg2: memref<8x8x32xf32, #tpu.memory_space<vmem>>, %arg3: memref<1x32xf32, #tpu.memory_space<vmem>>, %arg4: memref<1x32xf32, #tpu.memory_space<vmem>>, %arg5: memref<32x16xf32, #tpu.memory_space<vmem>>, %arg6: memref<1x16xf32, #tpu.memory_space<vmem>>, %arg7: memref<16x128xf32, #tpu.memory_space<vmem>>, %arg8: memref<1x128xf32, #tpu.memory_space<vmem>>, %arg9: memref<8x128xf32, #tpu.memory_space<vmem>>, %arg10: memref<8x32xf32, #tpu.memory_space<vmem>>) attributes {dimension_semantics = [#tpu.dimension_semantics<parallel>, #tpu.dimension_semantics<arbitrary>], iteration_bounds = array<i64: 1, 1>, scalar_prefetch = 0 : i64, scratch_operands = 1 : i64, tpu.core_type = #tpu.core_type<tc>, window_params = [{transform_indices = @transform_0, window_bounds = array<i64: 8, 8, 32>}, {pipeline_mode = #tpu.pipeline_mode<synchronous>, transform_indices = @transform_1, window_bounds = array<i64: 1, 32>}, {pipeline_mode = #tpu.pipeline_mode<synchronous>, transform_indices = @transform_2, window_bounds = array<i64: 1, 32>}, {pipeline_mode = #tpu.pipeline_mode<synchronous>, transform_indices = @transform_3, window_bounds = array<i64: 32, 16>}, {pipeline_mode = #tpu.pipeline_mode<synchronous>, transform_indices = @transform_4, window_bounds = array<i64: 1, 16>}, {pipeline_mode = #tpu.pipeline_mode<synchronous>, transform_indices = @transform_5, window_bounds = array<i64: 16, 128>}, {pipeline_mode = #tpu.pipeline_mode<synchronous>, transform_indices = @transform_6, window_bounds = array<i64: 1, 128>}, {transform_indices = @transform_7, window_bounds = array<i64: 8, 128>}]} {
    %c0_i32 = arith.constant 0 : i32
    %0 = arith.cmpi eq, %arg1, %c0_i32 : i32
    %1 = arith.extui %0 : i1 to i32
    %c0_i32_0 = arith.constant 0 : i32
    %2 = arith.cmpi ne, %1, %c0_i32_0 : i32
    scf.if %2 {
      %cst_11 = arith.constant 0.000000e+00 : f32
      %16 = vector.broadcast %cst_11 : f32 to vector<8x32xf32>
      %c0_12 = arith.constant 0 : index
      %c0_13 = arith.constant 0 : index
      %17 = vector.load %arg10[%c0_12, %c0_13] : memref<8x32xf32, #tpu.memory_space<vmem>>, vector<8x32xf32>
      tpu.vector_store %arg10[%c0_12, %c0_13], %16 {strides = array<i32>} : memref<8x32xf32, #tpu.memory_space<vmem>>, vector<8x32xf32>,
    } else {
    }
    %c0_i32_1 = arith.constant 0 : i32
    %c1_i32 = arith.constant 1 : i32
    %3 = arith.muli %c0_i32_1, %c1_i32 : i32
    %c0_i32_2 = arith.constant 0 : i32
    %4 = arith.addi %c0_i32_2, %3 : i32
    %c8_i32 = arith.constant 8 : i32
    %5 = arith.muli %4, %c8_i32 : i32
    %6 = tpu.assume_multiple %5, 8 : i32
    %c0 = arith.constant 0 : index
    %7 = arith.index_cast %6 : i32 to index
    %c0_3 = arith.constant 0 : index
    %8 = vector.load %arg2[%c0, %7, %c0_3] : memref<8x8x32xf32, #tpu.memory_space<vmem>>, vector<8x8x32xf32>
    %c0_4 = arith.constant 0 : index
    %c0_5 = arith.constant 0 : index
    %9 = vector.load %arg10[%c0_4, %c0_5] : memref<8x32xf32, #tpu.memory_space<vmem>>, vector<8x32xf32>
    %cst = arith.constant dense<0.000000e+00> : vector<8x32xf32>
    %10 = vector.multi_reduction <add>, %8, %cst [1] : vector<8x8x32xf32> to vector<8x32xf32>
    %11 = arith.addf %9, %10 : vector<8x32xf32>
    %c0_6 = arith.constant 0 : index
    %c0_7 = arith.constant 0 : index
    %12 = vector.load %arg10[%c0_6, %c0_7] : memref<8x32xf32, #tpu.memory_space<vmem>>, vector<8x32xf32>
    tpu.vector_store %arg10[%c0_6, %c0_7], %11 {strides = array<i32>} : memref<8x32xf32, #tpu.memory_space<vmem>>, vector<8x32xf32>,
    %c1_i32_8 = arith.constant 1 : i32
    %c0_i32_9 = arith.constant 0 : i32
    %13 = arith.cmpi eq, %arg1, %c0_i32_9 : i32
    %14 = arith.extui %13 : i1 to i32
    %c0_i32_10 = arith.constant 0 : i32
    %15 = arith.cmpi ne, %14, %c0_i32_10 : i32
    scf.if %15 {
      %c0_11 = arith.constant 0 : index
      %c0_12 = arith.constant 0 : index
      %16 = vector.load %arg10[%c0_11, %c0_12] : memref<8x32xf32, #tpu.memory_space<vmem>>, vector<8x32xf32>
      %cst_13 = arith.constant 1.250000e-01 : f32
      %17 = vector.broadcast %cst_13 : f32 to vector<8x32xf32>
      %18 = arith.mulf %16, %17 : vector<8x32xf32>
      %cst_14 = arith.constant dense<0.000000e+00> : vector<8xf32>
      %19 = vector.multi_reduction <add>, %18, %cst_14 [1] : vector<8x32xf32> to vector<8xf32>
      %20 = vector.shape_cast %19 : vector<8xf32> to vector<8x1xf32>
      %cst_15 = arith.constant 3.200000e+01 : f32
      %21 = vector.broadcast %cst_15 : f32 to vector<8x1xf32>
      %22 = arith.divf %20, %21 : vector<8x1xf32>
      %23 = vector.broadcast %22 : vector<8x1xf32> to vector<8x32xf32>
      %24 = arith.subf %18, %23 : vector<8x32xf32>
      %25 = arith.mulf %24, %24 : vector<8x32xf32>
      %cst_16 = arith.constant dense<0.000000e+00> : vector<8xf32>
      %26 = vector.multi_reduction <add>, %25, %cst_16 [1] : vector<8x32xf32> to vector<8xf32>
      %27 = vector.shape_cast %26 : vector<8xf32> to vector<8x1xf32>
      %cst_17 = arith.constant 3.200000e+01 : f32
      %28 = vector.broadcast %cst_17 : f32 to vector<8x1xf32>
      %29 = arith.divf %27, %28 : vector<8x1xf32>
      %cst_18 = arith.constant 9.99999974E-6 : f32
      %30 = vector.broadcast %cst_18 : f32 to vector<8x1xf32>
      %31 = arith.addf %29, %30 : vector<8x1xf32>
      %32 = math.rsqrt %31 : vector<8x1xf32>
      %33 = vector.broadcast %32 : vector<8x1xf32> to vector<8x32xf32>
      %34 = arith.mulf %24, %33 : vector<8x32xf32>
      %c0_19 = arith.constant 0 : index
      %c0_20 = arith.constant 0 : index
      %35 = vector.load %arg3[%c0_19, %c0_20] : memref<1x32xf32, #tpu.memory_space<vmem>>, vector<1x32xf32>
      %36 = vector.broadcast %35 : vector<1x32xf32> to vector<8x32xf32>
      %37 = arith.mulf %34, %36 : vector<8x32xf32>
      %c0_21 = arith.constant 0 : index
      %c0_22 = arith.constant 0 : index
      %38 = vector.load %arg4[%c0_21, %c0_22] : memref<1x32xf32, #tpu.memory_space<vmem>>, vector<1x32xf32>
      %39 = vector.broadcast %38 : vector<1x32xf32> to vector<8x32xf32>
      %40 = arith.addf %37, %39 : vector<8x32xf32>
      %c0_23 = arith.constant 0 : index
      %c0_24 = arith.constant 0 : index
      %41 = vector.load %arg5[%c0_23, %c0_24] : memref<32x16xf32, #tpu.memory_space<vmem>>, vector<32x16xf32>
      %cst_25 = arith.constant dense<0.000000e+00> : vector<8x16xf32>
      %42 = tpu.matmul %40, %41, %cst_25 {dimension_numbers = #tpu.dot_dimension_numbers<[1], [0], [0], [1], [0, 0, 1, 1], [], []>} : vector<8x32xf32>, vector<32x16xf32>, vector<8x16xf32> -> vector<8x16xf32>
      %c0_26 = arith.constant 0 : index
      %c0_27 = arith.constant 0 : index
      %43 = vector.load %arg6[%c0_26, %c0_27] : memref<1x16xf32, #tpu.memory_space<vmem>>, vector<1x16xf32>
      %44 = vector.broadcast %43 : vector<1x16xf32> to vector<8x16xf32>
      %45 = arith.addf %42, %44 : vector<8x16xf32>
      %cst_28 = arith.constant 0.000000e+00 : f32
      %46 = vector.broadcast %cst_28 : f32 to vector<8x16xf32>
      %47 = arith.maximumf %45, %46 : vector<8x16xf32>
      %c0_29 = arith.constant 0 : index
      %c0_30 = arith.constant 0 : index
      %48 = vector.load %arg7[%c0_29, %c0_30] : memref<16x128xf32, #tpu.memory_space<vmem>>, vector<16x128xf32>
      %cst_31 = arith.constant dense<0.000000e+00> : vector<8x128xf32>
      %49 = tpu.matmul %47, %48, %cst_31 {dimension_numbers = #tpu.dot_dimension_numbers<[1], [0], [0], [1], [0, 0, 1, 1], [], []>} : vector<8x16xf32>, vector<16x128xf32>, vector<8x128xf32> -> vector<8x128xf32>
      %c0_32 = arith.constant 0 : index
      %c0_33 = arith.constant 0 : index
      %50 = vector.load %arg8[%c0_32, %c0_33] : memref<1x128xf32, #tpu.memory_space<vmem>>, vector<1x128xf32>
      %51 = vector.broadcast %50 : vector<1x128xf32> to vector<8x128xf32>
      %52 = arith.addf %49, %51 : vector<8x128xf32>
      %c0_34 = arith.constant 0 : index
      %c0_35 = arith.constant 0 : index
      %53 = vector.load %arg9[%c0_34, %c0_35] : memref<8x128xf32, #tpu.memory_space<vmem>>, vector<8x128xf32>
      tpu.vector_store %arg9[%c0_34, %c0_35], %52 {strides = array<i32>} : memref<8x128xf32, #tpu.memory_space<vmem>>, vector<8x128xf32>,
    } else {
    }
    return
  }
  func.func @transform_0(%arg0: i32, %arg1: i32) -> (i32, i32, i32) {
    %c0_i32 = arith.constant 0 : i32
    %c0_i32_0 = arith.constant 0 : i32
    return %arg0, %arg1, %c0_i32 : i32, i32, i32
  }
  func.func @transform_1(%arg0: i32, %arg1: i32) -> (i32, i32) {
    %c0_i32 = arith.constant 0 : i32
    %c0_i32_0 = arith.constant 0 : i32
    %c0_i32_1 = arith.constant 0 : i32
    return %c0_i32, %c0_i32_0 : i32, i32
  }
  func.func @transform_2(%arg0: i32, %arg1: i32) -> (i32, i32) {
    %c0_i32 = arith.constant 0 : i32
    %c0_i32_0 = arith.constant 0 : i32
    %c0_i32_1 = arith.constant 0 : i32
    return %c0_i32, %c0_i32_0 : i32, i32
  }
  func.func @transform_3(%arg0: i32, %arg1: i32) -> (i32, i32) {
    %c0_i32 = arith.constant 0 : i32
    %c0_i32_0 = arith.constant 0 : i32
    %c0_i32_1 = arith.constant 0 : i32
    return %c0_i32, %c0_i32_0 : i32, i32
  }
  func.func @transform_4(%arg0: i32, %arg1: i32) -> (i32, i32) {
    %c0_i32 = arith.constant 0 : i32
    %c0_i32_0 = arith.constant 0 : i32
    %c0_i32_1 = arith.constant 0 : i32
    return %c0_i32, %c0_i32_0 : i32, i32
  }
  func.func @transform_5(%arg0: i32, %arg1: i32) -> (i32, i32) {
    %c0_i32 = arith.constant 0 : i32
    %c0_i32_0 = arith.constant 0 : i32
    %c0_i32_1 = arith.constant 0 : i32
    return %c0_i32, %c0_i32_0 : i32, i32
  }
  func.func @transform_6(%arg0: i32, %arg1: i32) -> (i32, i32) {
    %c0_i32 = arith.constant 0 : i32
    %c0_i32_0 = arith.constant 0 : i32
    %c0_i32_1 = arith.constant 0 : i32
    return %c0_i32, %c0_i32_0 : i32, i32
  }
  func.func @transform_7(%arg0: i32, %arg1: i32) -> (i32, i32) {
    %c0_i32 = arith.constant 0 : i32
    %c0_i32_0 = arith.constant 0 : i32
    return %arg0, %c0_i32 : i32, i32
  }
}

</mosaic_0001>

<bundles_post_ra>
// kernel: tpu_custom_call.1
= control target key start
LH: loop header
LB: loop body
LE: loop exit
PB: predicated region body
PF: predicated region fallthrough
CT: control target
= control target key end

     0   :  { %vm31_vm0 = vcmask 261120   ;;  %v290_v3 = vmov 0.0   ;;  %vm107_vm1 = vcmask 1041409   ;;  %s406_s0 = inlined_call_operand.vmem [shape: f32[2,8,32], index: 0, kind: input, shape index: {}]   ;;  %s407_s1 = inlined_call_operand.vmem [shape: f32[1,32], index: 1, kind: input, shape index: {}]   ;;  %s408_s2 = inlined_call_operand.vmem [shape: f32[1,32], index: 2, kind: input, shape index: {}]   ;;  %s409_s3 = inlined_call_operand.vmem [shape: f32[32,16], index: 3, kind: input, shape index: {}]   ;;  %s410_s4 = inlined_call_operand.vmem [shape: f32[1,16], index: 4, kind: input, shape index: {}]   ;;  %s411_s5 = inlined_call_operand.vmem [shape: f32[16,128], index: 5, kind: input, shape index: {}]   ;;  %s412_s6 = inlined_call_operand.vmem [shape: f32[1,128], index: 6, kind: input, shape index: {}]   ;;  %s413_s7 = inlined_call_operand.hbm [shape: f32[2,128], index: 7, kind: output, shape index: {}]  }
   0x1   :  { %v33_v0 = vld [vmem:[%s406_s0] sm:$0xff]  ;;  %v34_v1 = vld [vmem:[%s406_s0 + $0x8] sm:$0xff]  ;;  %v35_v2 = vld [vmem:[%s406_s0 + $0x10] sm:$0xff]  ;;  %32 = vst.msk [vmem:[#allocation2] sm:$0xff] %vm31_vm0, %v290_v3 }
   0x2   :  { %v36_v4 = vld [vmem:[%s406_s0 + $0x18] sm:$0xff]  ;;  %v37_v5 = vld [vmem:[%s406_s0 + $0x20] sm:$0xff]  ;;  %v38_v6 = vld [vmem:[%s406_s0 + $0x28] sm:$0xff]  ;;  %v43_v7 = vsel %vm31_vm0, %v33_v0, 0.0  ;;  %v50_v8 = vsel %vm31_vm0, %v34_v1, 0.0  ;;  %v57_v13 = vsel %vm31_vm0, %v35_v2, 0.0 }
   0x3   :  { %v39_v9 = vld [vmem:[%s406_s0 + $0x30] sm:$0xff]  ;;  %v40_v10 = vld [vmem:[%s406_s0 + $0x38] sm:$0xff]  ;;  %v44_v11 = vrot.slane %v43_v7, 4  ;;  %v51_v12 = vrot.slane %v50_v8, 4  ;;  %v64_v14 = vsel %vm31_vm0, %v36_v4, 0.0  ;;  %v58_v15 = vrot.slane %v57_v13, 4 }
   0x4   :  { %v65_v16 = vrot.slane %v64_v14, 4  ;;  %v71_v17 = vsel %vm31_vm0, %v37_v5, 0.0  ;;  %v78_v18 = vsel %vm31_vm0, %v38_v6, 0.0 }
   0x5   :  { %12 = vsyncpa [#allocation4], 0  ;;  %v45_v19 = vadd.f32 %v44_v11, %v43_v7  ;;  %v52_v20 = vadd.f32 %v51_v12, %v50_v8  ;;  %v72_v21 = vrot.slane %v71_v17, 4  ;;  %v79_v22 = vrot.slane %v78_v18, 4 }
   0x6   :  { %v59_v23 = vadd.f32 %v58_v15, %v57_v13  ;;  %v66_v24 = vadd.f32 %v65_v16, %v64_v14  ;;  %v85_v25 = vsel %vm31_vm0, %v39_v9, 0.0  ;;  %v92_v26 = vsel %vm31_vm0, %v40_v10, 0.0 }
   0x7   :  { %v46_v27 = vrot.slane %v45_v19, 2  ;;  %v53_v28 = vrot.slane %v52_v20, 2  ;;  %v73_v29 = vadd.f32 %v72_v21, %v71_v17  ;;  %v80_v30 = vadd.f32 %v79_v22, %v78_v18 }
   0x8   :  { %v60_v31 = vrot.slane %v59_v23, 2  ;;  %v67_v32 = vrot.slane %v66_v24, 2  ;;  %v86_v33 = vrot.slane %v85_v25, 4  ;;  %v93_v34 = vrot.slane %v92_v26, 4  ;;  %v41_v5 = vld [vmem:[#allocation2] sm:$0xff] }
   0x9   :  { %v47_v35 = vadd.f32 %v46_v27, %v45_v19  ;;  %v54_v36 = vadd.f32 %v53_v28, %v52_v20  ;;  %v74_v37 = vrot.slane %v73_v29, 2  ;;  %v81_v38 = vrot.slane %v80_v30, 2  ;;  %v169_v27 = vld [vmem:[%s409_s3 + $0x8] sm:$0xff]  ;;  %v168_v28 = vld [vmem:[%s409_s3] sm:$0xff] }
   0xa   :  { %v61_v39 = vadd.f32 %v60_v31, %v59_v23  ;;  %v68_v40 = vadd.f32 %v67_v32, %v66_v24  ;;  %v87_v41 = vadd.f32 %v86_v33, %v85_v25  ;;  %v94_v42 = vadd.f32 %v93_v34, %v92_v26  ;;  %v171_v25 = vld [vmem:[%s409_s3 + $0x18] sm:$0xff]  ;;  %v170_v26 = vld [vmem:[%s409_s3 + $0x10] sm:$0xff] }
   0xb   :  { %v48_v43 = vrot.slane %v47_v35, 1  ;;  %v55_v44 = vrot.slane %v54_v36, 1  ;;  %v75_v45 = vadd.f32 %v74_v37, %v73_v29  ;;  %v82_v46 = vadd.f32 %v81_v38, %v80_v30  ;;  %191 = vmatpush.msra.mxu0 %v171_v25  ;;  %v256_v38 = vld [vmem:[%s407_s1] ss:$0 sm:$0xff] }
   0xc   :  { %v62_v47 = vrot.slane %v61_v39, 1  ;;  %v69_v48 = vrot.slane %v68_v40, 1  ;;  %v88_v49 = vrot.slane %v87_v41, 2  ;;  %v95_v50 = vrot.slane %v94_v42, 2 }
   0xd   :  { %v49_v51 = vadd.f32 %v48_v43, %v47_v35  ;;  %v56_v52 = vadd.f32 %v55_v44, %v54_v36  ;;  %v76_v53 = vrot.slane %v75_v45, 1  ;;  %v83_v54 = vrot.slane %v82_v46, 1  ;;  %192 = vmatpush.msra.mxu0 %v170_v26  ;;  %v201_v44 = vld [vmem:[%s411_s5 + $0x8] sm:$0xff] }
   0xe   :  { %v63_v55 = vadd.f32 %v62_v47, %v61_v39  ;;  %v70_v56 = vadd.f32 %v69_v48, %v68_v40  ;;  %v89_v57 = vadd.f32 %v88_v49, %v87_v41  ;;  %v96_v58 = vadd.f32 %v95_v50, %v94_v42  ;;  %v257_v41 = vld [vmem:[%s408_s2] ss:$0 sm:$0xff]  ;;  %224 = vmatpush.msra.mxu1 %v201_v44 }
   0xf   :  { %v77_v59 = vadd.f32 %v76_v53, %v75_v45  ;;  %v84_v60 = vadd.f32 %v83_v54, %v82_v46  ;;  %v108_v61 = vsel %vm107_vm1, %v56_v52, %v49_v51  ;;  %vm109_vm2 = vcmask 1042434   ;;  %193 = vmatpush.msra.mxu0 %v169_v27  ;;  %v200_v45 = vld [vmem:[%s411_s5] sm:$0xff] }
  0x10   :  { %v90_v62 = vrot.slane %v89_v57, 1  ;;  %v97_v63 = vrot.slane %v96_v58, 1  ;;  %v110_v0 = vsel %vm109_vm2, %v63_v55, %v108_v61  ;;  %vm111_vm3 = vcmask 1043459   ;;  %225 = vmatpush.msra.mxu1 %v200_v45  ;;  %v258_v46 = vld [vmem:[%s410_s4] ss:$0 sm:$0xff] }
  0x11   :  { %v112_v1 = vsel %vm111_vm3, %v70_v56, %v110_v0  ;;  %vm113_vm4 = vcmask 1044484   ;;  %vm115_vm5 = vcmask 1045509   ;;  %vm117_vm6 = vcmask 1046534   ;;  %194 = vmatpush.msra.mxu0 %v168_v28  ;;  %v259_v50 = vld [vmem:[%s412_s6] ss:$0 sm:$0xff] }
  0x12   :  { %v91_v2 = vadd.f32 %v90_v62, %v89_v57  ;;  %v98_v3 = vadd.f32 %v97_v63, %v96_v58  ;;  %v114_v4 = vsel %vm113_vm4, %v77_v59, %v112_v1  ;;  %vm119_vm7 = vcmask 1047559  }
  0x13   :  { %v116_v6 = vsel %vm115_vm5, %v84_v60, %v114_v4  ;;  %v291_v13 = vmov 32.0   ;;  %vm206_vm12 = vcmask 130048  }
  0x14   :  { %v118_v7 = vsel %vm117_vm6, %v91_v2, %v116_v6  ;;  %260 = vrcp.f32 %v291_v13 }
  0x15   :  { %v120_v8 = vsel %vm119_vm7, %v98_v3, %v118_v7 }
  0x16   :  { %v122_v9 = vadd.f32 %v120_v8, %v41_v5 }
  0x18   :  { %123 = vst.msk [vmem:[#allocation2] sm:$0xff] %vm31_vm0, %v122_v9 }
  0x1a   :  { %v261_v14 = vpop.eup %260 }
  0x1b   :  { %v133_v15 = vmul.f32 32.0, %v261_v14  ;;  %vm137_vm8 = vweird.f32 %v261_v14 }
  0x1d   :  { %v134_v16 = vsub.f32 1.0, %v133_v15 }
  0x1f   :  { %v127_v10 = vld [vmem:[#allocation2] sm:$0xff]  ;;  %v135_v17 = vmul.f32 %v261_v14, %v134_v16 }
  0x20   :  { %v128_v11 = vmul.f32 0.125, %v127_v10 }
  0x21   :  { %v136_v18 = vadd.f32 %v261_v14, %v135_v17 }
  0x22   :  { %v129_v12 = vsel %vm31_vm0, %v128_v11, 0.0 }
  0x23   :  { %130 = vadd.xlane.f32.xlu0 %v129_v12  ;;  %v138_v19 = vsel %vm137_vm8, %v261_v14, %v136_v18 }
  0x96   :  { %v131_v20 = vpop.xlane.xlu0 %130 }
  0x97   :  { %v139_v21 = vmul.f32 %v138_v19, %v131_v20 }
  0x99   :  { %v140_v22 = vsub.f32 %v128_v11, %v139_v21 }
  0x9b   :  { %v141_v23 = vmul.f32 %v140_v22, %v140_v22 }
  0x9d   :  { %v142_v24 = vsel %vm31_vm0, %v141_v23, 0.0 }
  0x9e   :  { %143 = vadd.xlane.f32.xlu0 %v142_v24 }
 0x111   :  { %v144_v29 = vpop.xlane.xlu0 %143 }
 0x112   :  { %v145_v30 = vmul.f32 %v144_v29, %v138_v19 }
 0x114   :  { %v146_v31 = vadd.f32 1e-05, %v145_v30 }
 0x116   :  { %262 = vrsqrt.f32 %v146_v31  ;;  %vm153_vm10 = vweird.f32 %v146_v31 }
 0x11c   :  { %v263_v32 = vpop.eup %262 }
 0x11d   :  { %v148_v33 = vmul.f32 %v263_v32, %v146_v31  ;;  %vm154_vm9 = vweird.f32 %v263_v32 }
 0x11e   :  { %vm155_vm11 = vmor %vm153_vm10, %vm154_vm9 }
 0x11f   :  { %v149_v34 = vmul.f32 %v263_v32, %v148_v33 }
 0x121   :  { %v150_v35 = vmul.f32 0.5, %v149_v34 }
 0x123   :  { %v151_v36 = vsub.f32 1.5, %v150_v35 }
 0x125   :  { %v152_v37 = vmul.f32 %v263_v32, %v151_v36 }
 0x127   :  { %v156_v39 = vsel %vm155_vm11, %v263_v32, %v152_v37 }
 0x128   :  { %v157_v40 = vmul.f32 %v156_v39, %v140_v22 }
 0x12a   :  { %v162_v42 = vmul.f32 %v256_v38, %v157_v40 }
 0x12c   :  { %v167_v43 = vadd.f32 %v257_v41, %v162_v42 }
 0x12e   :  { %249 = vmatmul.msk.f32.vlgmr.msra.gmra.mxu0 %vm31_vm0, %v167_v43 }
 0x1ab   :  { %v196_v47 = vpop.f32.mrf.mxu0 }
 0x1ac   :  { %v197_v48 = vadd.f32 %v258_v46, %v196_v47 }
 0x1ae   :  { %v199_v49 = vmax.f32 %v197_v48, 0.0 }
 0x1b0   :  { %250 = vmatmul.msk.f32.vlgmr.msra.gmra.mxu1 %vm206_vm12, %v199_v49 }
 0x22d   :  { %v227_v51 = vpop.f32.mrf.mxu1 }
 0x22e   :  { %v228_v52 = vadd.f32 %v259_v50, %v227_v51 }
 0x230   :  { %230 = vst [vmem:[#allocation3] sm:$0xff] %v228_v52 }
 0x231   :  { %234 = vsyncadd [#allocation4], 96  ;;  %s237_s11 = sshll.u32 %s413_s7, 4  ;;  %s292_s12 = smov [#allocation3]   ;;  %s238_s11 = int_to_ptr.hbm [resolvable:$true] %s237_s11 }
 0x232   :  { %s235_s13 = sshll.u32 %s292_s12, 4  ;;  %s293_s4 = smov 32   ;;  %s236_s13 = int_to_ptr.vmem [resolvable:$true] %s235_s13 }
 0x233   :  { %s294_s14 = smov 2  }
 0x234   :  { %243 = dma.vmem_to_hbm [thread:$0]  %s236_s13, 32, %s238_s11, [#allocation4], %s293_s4, %s293_s4, %s294_s14  }
 0x235   :  { %288 = dma.done.wait [#allocation4], 128  }
 0x236   :  { %289 = vsyncadd [#allocation4], 4294967168 }
 0x237   :  { %248 = vsyncpa [#allocation4], 1 }

</bundles_post_ra>
